<compile_context>
chip_gen: v5e
topology: v5e:2x2
jax: 0.10.0
libtpu: 0.0.40
codegen_flags: <defaults>
</compile_context>

<pallas_src>
import functools
import math

import jax
import jax.numpy as jnp
from jax.experimental import pallas as pl
from jax.experimental.pallas import tpu as pltpu


def _round_up(x, m):
    return ((x + m - 1) // m) * m


def _fused_mlp_kernel(*refs, n_layers):
    """Entire MLP in one kernel body.

    refs = (x_ref, w0, b0, w1, b1, ..., w_{L-1}, b_{L-1}, o_ref)
      x_ref : [TILE_B, F0]      (VMEM, batch tile, f32)
      w_i   : [Fi, F(i+1)]      (VMEM, full array, bf16, grid-invariant)
      b_i   : [1,  F(i+1)]      (VMEM, full array, f32,  grid-invariant)
      o_ref : [TILE_B, F_last]  (f32)
    Intermediate activations never leave VMEM/vregs. bf16 operands feed the
    MXU; accumulation, bias add and ReLU are done in f32.
    """
    x_ref = refs[0]
    o_ref = refs[-1]
    wb = refs[1:-1]

    x = x_ref[...].astype(jnp.bfloat16)
    y = x_ref[...]  # placeholder; overwritten in first iteration
    for i in range(n_layers):
        w = wb[2 * i][...]           # bf16
        b = wb[2 * i + 1][...]       # f32, shape (1, f_out)
        y = jnp.dot(x, w, preferred_element_type=jnp.float32) + b
        if i < n_layers - 1:
            x = jnp.maximum(y, 0.0).astype(jnp.bfloat16)  # fused ReLU, hidden only
    o_ref[...] = y.astype(o_ref.dtype)


def qnetwork_forward(params, state, *, tile_b=512):
    """Fused forward pass matching QNetwork.forward (final layer pre-activation).

    params: list of (W [f_in, f_out], b [f_out]) float32 arrays.
    state : [B, state_size] float32.
    """
    B, state_size = state.shape
    n_layers = len(params)
    action_size = params[-1][0].shape[1]

    # ---- batch tiling (only the batch dim is ever padded) -------------------
    if B <= 8:
        tb = 8                                  # one minimal sublane-aligned tile
    elif B <= 2 * tile_b:
        tb = _round_up((B + 1) // 2, 8)         # >=2 tiles -> both v7x TensorCores
    else:
        tb = tile_b
    B_pad = _round_up(B, tb)
    num_tiles = B_pad // tb

    if B_pad != B:
        x_p = jnp.zeros((B_pad, state_size), state.dtype).at[:B].set(state)
    else:
        x_p = state                              # no wrapper-side pad pass at all

    # ---- specs / operands ----------------------------------------------------
    in_specs = [pl.BlockSpec((tb, state_size), lambda i: (i, 0))]
    flat_wb = []
    for w, b in params:
        f_in, f_out = w.shape
        flat_wb.append(w.astype(jnp.bfloat16))       # bf16 weights: native MXU path
        flat_wb.append(b.reshape(1, f_out))          # bias stays f32 (f32 accumulate)
        # Full-array, grid-invariant blocks; Pallas keeps them resident in VMEM
        # across batch tiles (index_map constant).
        # TODO(synk): if fc_units grows to multi-MiB weights (esp. v7x 64 MiB VMEM),
        # add pipeline_mode=pl.Buffered(1) here plus a K/N reduction grid axis.
        in_specs.append(pl.BlockSpec((f_in, f_out), lambda i: (0, 0)))
        in_specs.append(pl.BlockSpec((1, f_out), lambda i: (0, 0)))

    out_spec = pl.BlockSpec((tb, action_size), lambda i: (i, 0))

    itemsize = jnp.dtype(state.dtype).itemsize
    flops = 2 * B_pad * sum(w.shape[0] * w.shape[1] for w, _ in params)
    bytes_accessed = (
        B_pad * state_size * itemsize
        + sum(int(a.size) * a.dtype.itemsize for a in flat_wb)
        + B_pad * action_size * itemsize
    )

    out_p = pl.pallas_call(
        functools.partial(_fused_mlp_kernel, n_layers=n_layers),
        out_shape=jax.ShapeDtypeStruct((B_pad, action_size), state.dtype),
        grid=(num_tiles,),
        in_specs=in_specs,
        out_specs=out_spec,
        compiler_params=pltpu.CompilerParams(
            dimension_semantics=("parallel",),   # batch tiles are independent
        ),
        cost_estimate=pl.CostEstimate(
            flops=flops, transcendentals=0, bytes_accessed=bytes_accessed
        ),
    )(x_p, *flat_wb)

    return out_p if B_pad == B else out_p[:B]


def init_qnetwork_params(key, state_size, action_size, fc_units):
    """Deterministic init mimicking nn.Linear default (U(-1/sqrt(fan_in), +))."""
    sizes = [state_size] + list(fc_units) + [action_size]
    params = []
    for i in range(len(sizes) - 1):
        f_in, f_out = sizes[i], sizes[i + 1]
        key, kw, kb = jax.random.split(key, 3)
        bound = 1.0 / math.sqrt(f_in)
        w = jax.random.uniform(kw, (f_in, f_out), jnp.float32, -bound, bound)
        b = jax.random.uniform(kb, (f_out,), jnp.float32, -bound, bound)
        params.append((w, b))
    return params


def _reference_forward(params, state):
    """Pure-JAX reference with matching precision (bf16 operands, f32 accumulate)."""
    x = state
    y = state
    for w, b in params:
        y = jnp.dot(
            x.astype(jnp.bfloat16),
            w.astype(jnp.bfloat16),
            preferred_element_type=jnp.float32,
        ) + b
        x = jnp.maximum(y, 0.0)
    return y


if __name__ == "__main__":
    state_size = 16
    fc_units = [32, 32]
    action_size = 4

    key = jax.random.PRNGKey(0)
    k_params, k_state1, k_state2 = jax.random.split(key, 3)
    params = init_qnetwork_params(k_params, state_size, action_size, fc_units)

    # Small batch: single tile, no batch padding.
    state_a = jax.random.normal(k_state1, (8, state_size), jnp.float32)
    out_a = qnetwork_forward(params, state_a)
    jax.block_until_ready(out_a)
    ref_a = _reference_forward(params, state_a)
    assert out_a.shape == (8, action_size)
    assert jnp.allclose(out_a, ref_a, atol=2e-3, rtol=2e-3)

    # Slightly larger batch: exercises the 2-tile + batch-padding path.
    state_b = jax.random.normal(k_state2, (20, state_size), jnp.float32)
    out_b = qnetwork_forward(params, state_b)
    jax.block_until_ready(out_b)
    ref_b = _reference_forward(params, state_b)
    assert out_b.shape == (20, action_size)
    assert jnp.allclose(out_b, ref_b, atol=2e-3, rtol=2e-3)

    print("KERNEL_OK")
</pallas_src>

<mosaic_0001>
module attributes {stable_mosaic.version = 11 : i64} {
  func.func @_fused_mlp_kernel(%arg0: i32, %arg1: memref<8x16xf32, #tpu.memory_space<vmem>>, %arg2: memref<16x32xbf16, #tpu.memory_space<vmem>>, %arg3: memref<1x32xf32, #tpu.memory_space<vmem>>, %arg4: memref<32x32xbf16, #tpu.memory_space<vmem>>, %arg5: memref<1x32xf32, #tpu.memory_space<vmem>>, %arg6: memref<32x4xbf16, #tpu.memory_space<vmem>>, %arg7: memref<1x4xf32, #tpu.memory_space<vmem>>, %arg8: memref<8x4xf32, #tpu.memory_space<vmem>>) attributes {dimension_semantics = [#tpu.dimension_semantics<parallel>], iteration_bounds = array<i64: 1>, scalar_prefetch = 0 : i64, scratch_operands = 0 : i64, tpu.core_type = #tpu.core_type<tc>, window_params = [{transform_indices = @transform_0, window_bounds = array<i64: 8, 16>}, {pipeline_mode = #tpu.pipeline_mode<synchronous>, transform_indices = @transform_1, window_bounds = array<i64: 16, 32>}, {pipeline_mode = #tpu.pipeline_mode<synchronous>, transform_indices = @transform_2, window_bounds = array<i64: 1, 32>}, {pipeline_mode = #tpu.pipeline_mode<synchronous>, transform_indices = @transform_3, window_bounds = array<i64: 32, 32>}, {pipeline_mode = #tpu.pipeline_mode<synchronous>, transform_indices = @transform_4, window_bounds = array<i64: 1, 32>}, {pipeline_mode = #tpu.pipeline_mode<synchronous>, transform_indices = @transform_5, window_bounds = array<i64: 32, 4>}, {pipeline_mode = #tpu.pipeline_mode<synchronous>, transform_indices = @transform_6, window_bounds = array<i64: 1, 4>}, {transform_indices = @transform_7, window_bounds = array<i64: 8, 4>}]} {
    %c0 = arith.constant 0 : index
    %c0_0 = arith.constant 0 : index
    %0 = vector.load %arg1[%c0, %c0_0] : memref<8x16xf32, #tpu.memory_space<vmem>>, vector<8x16xf32>
    %1 = arith.truncf %0 : vector<8x16xf32> to vector<8x16xbf16>
    %c0_1 = arith.constant 0 : index
    %c0_2 = arith.constant 0 : index
    %2 = vector.load %arg2[%c0_1, %c0_2] : memref<16x32xbf16, #tpu.memory_space<vmem>>, vector<16x32xbf16>
    %c0_3 = arith.constant 0 : index
    %c0_4 = arith.constant 0 : index
    %3 = vector.load %arg3[%c0_3, %c0_4] : memref<1x32xf32, #tpu.memory_space<vmem>>, vector<1x32xf32>
    %cst = arith.constant dense<0.000000e+00> : vector<8x32xf32>
    %4 = tpu.matmul %1, %2, %cst {dimension_numbers = #tpu.dot_dimension_numbers<[1], [0], [0], [1], [0, 0, 1, 1], [], []>} : vector<8x16xbf16>, vector<16x32xbf16>, vector<8x32xf32> -> vector<8x32xf32>
    %5 = vector.broadcast %3 : vector<1x32xf32> to vector<8x32xf32>
    %6 = arith.addf %4, %5 : vector<8x32xf32>
    %cst_5 = arith.constant 0.000000e+00 : f32
    %7 = vector.broadcast %cst_5 : f32 to vector<8x32xf32>
    %8 = arith.maximumf %6, %7 : vector<8x32xf32>
    %9 = arith.truncf %8 : vector<8x32xf32> to vector<8x32xbf16>
    %c0_6 = arith.constant 0 : index
    %c0_7 = arith.constant 0 : index
    %10 = vector.load %arg4[%c0_6, %c0_7] : memref<32x32xbf16, #tpu.memory_space<vmem>>, vector<32x32xbf16>
    %c0_8 = arith.constant 0 : index
    %c0_9 = arith.constant 0 : index
    %11 = vector.load %arg5[%c0_8, %c0_9] : memref<1x32xf32, #tpu.memory_space<vmem>>, vector<1x32xf32>
    %cst_10 = arith.constant dense<0.000000e+00> : vector<8x32xf32>
    %12 = tpu.matmul %9, %10, %cst_10 {dimension_numbers = #tpu.dot_dimension_numbers<[1], [0], [0], [1], [0, 0, 1, 1], [], []>} : vector<8x32xbf16>, vector<32x32xbf16>, vector<8x32xf32> -> vector<8x32xf32>
    %13 = vector.broadcast %11 : vector<1x32xf32> to vector<8x32xf32>
    %14 = arith.addf %12, %13 : vector<8x32xf32>
    %cst_11 = arith.constant 0.000000e+00 : f32
    %15 = vector.broadcast %cst_11 : f32 to vector<8x32xf32>
    %16 = arith.maximumf %14, %15 : vector<8x32xf32>
    %17 = arith.truncf %16 : vector<8x32xf32> to vector<8x32xbf16>
    %c0_12 = arith.constant 0 : index
    %c0_13 = arith.constant 0 : index
    %18 = vector.load %arg6[%c0_12, %c0_13] : memref<32x4xbf16, #tpu.memory_space<vmem>>, vector<32x4xbf16>
    %c0_14 = arith.constant 0 : index
    %c0_15 = arith.constant 0 : index
    %19 = vector.load %arg7[%c0_14, %c0_15] : memref<1x4xf32, #tpu.memory_space<vmem>>, vector<1x4xf32>
    %cst_16 = arith.constant dense<0.000000e+00> : vector<8x4xf32>
    %20 = tpu.matmul %17, %18, %cst_16 {dimension_numbers = #tpu.dot_dimension_numbers<[1], [0], [0], [1], [0, 0, 1, 1], [], []>} : vector<8x32xbf16>, vector<32x4xbf16>, vector<8x4xf32> -> vector<8x4xf32>
    %21 = vector.broadcast %19 : vector<1x4xf32> to vector<8x4xf32>
    %22 = arith.addf %20, %21 : vector<8x4xf32>
    %c0_17 = arith.constant 0 : index
    %c0_18 = arith.constant 0 : index
    %23 = vector.load %arg8[%c0_17, %c0_18] : memref<8x4xf32, #tpu.memory_space<vmem>>, vector<8x4xf32>
    tpu.vector_store %arg8[%c0_17, %c0_18], %22 {strides = array<i32>} : memref<8x4xf32, #tpu.memory_space<vmem>>, vector<8x4xf32>,
    return
  }
  func.func @transform_0(%arg0: i32) -> (i32, i32) {
    %c0_i32 = arith.constant 0 : i32
    %c0_i32_0 = arith.constant 0 : i32
    return %arg0, %c0_i32 : i32, i32
  }
  func.func @transform_1(%arg0: i32) -> (i32, i32) {
    %c0_i32 = arith.constant 0 : i32
    %c0_i32_0 = arith.constant 0 : i32
    %c0_i32_1 = arith.constant 0 : i32
    return %c0_i32, %c0_i32_0 : i32, i32
  }
  func.func @transform_2(%arg0: i32) -> (i32, i32) {
    %c0_i32 = arith.constant 0 : i32
    %c0_i32_0 = arith.constant 0 : i32
    %c0_i32_1 = arith.constant 0 : i32
    return %c0_i32, %c0_i32_0 : i32, i32
  }
  func.func @transform_3(%arg0: i32) -> (i32, i32) {
    %c0_i32 = arith.constant 0 : i32
    %c0_i32_0 = arith.constant 0 : i32
    %c0_i32_1 = arith.constant 0 : i32
    return %c0_i32, %c0_i32_0 : i32, i32
  }
  func.func @transform_4(%arg0: i32) -> (i32, i32) {
    %c0_i32 = arith.constant 0 : i32
    %c0_i32_0 = arith.constant 0 : i32
    %c0_i32_1 = arith.constant 0 : i32
    return %c0_i32, %c0_i32_0 : i32, i32
  }
  func.func @transform_5(%arg0: i32) -> (i32, i32) {
    %c0_i32 = arith.constant 0 : i32
    %c0_i32_0 = arith.constant 0 : i32
    %c0_i32_1 = arith.constant 0 : i32
    return %c0_i32, %c0_i32_0 : i32, i32
  }
  func.func @transform_6(%arg0: i32) -> (i32, i32) {
    %c0_i32 = arith.constant 0 : i32
    %c0_i32_0 = arith.constant 0 : i32
    %c0_i32_1 = arith.constant 0 : i32
    return %c0_i32, %c0_i32_0 : i32, i32
  }
  func.func @transform_7(%arg0: i32) -> (i32, i32) {
    %c0_i32 = arith.constant 0 : i32
    %c0_i32_0 = arith.constant 0 : i32
    return %arg0, %c0_i32 : i32, i32
  }
}

</mosaic_0001>

<bundles_post_ra>
// kernel: tpu_custom_call.1
= control target key start
LH: loop header
LB: loop body
LE: loop exit
PB: predicated region body
PF: predicated region fallthrough
CT: control target
= control target key end

     0   :  { %12 = vsyncpa [#allocation3], 0  ;;  %s334_s0 = inlined_call_operand.hbm [shape: f32[8,16], index: 0, kind: input, shape index: {}]   ;;  %s335_s1 = inlined_call_operand.hbm [shape: bf16[16,32], index: 1, kind: input, shape index: {}]   ;;  %s336_s2 = inlined_call_operand.vmem [shape: f32[1,32], index: 2, kind: input, shape index: {}]   ;;  %s337_s3 = inlined_call_operand.vmem [shape: bf16[32,32], index: 3, kind: input, shape index: {}]   ;;  %s338_s4 = inlined_call_operand.vmem [shape: f32[1,32], index: 4, kind: input, shape index: {}]   ;;  %s339_s5 = inlined_call_operand.vmem [shape: bf16[32,4], index: 5, kind: input, shape index: {}]   ;;  %s340_s6 = inlined_call_operand.vmem [shape: f32[1,4], index: 6, kind: input, shape index: {}]   ;;  %s341_s7 = inlined_call_operand.vmem [shape: f32[8,4], index: 7, kind: output, shape index: {}]  }
   0x1   :  { %s19_s26 = sshll.u32 %s334_s0, 4  ;;  %s20_s26 = int_to_ptr.hbm [resolvable:$true] %s19_s26 }
   0x2   :  { %13 = vsyncpa [#allocation5], 0  ;;  %s260_s27 = smov [#allocation2]   ;;  %s29_s8 = sshll.u32 %s335_s1, 4  ;;  %s30_s8 = int_to_ptr.hbm [resolvable:$true] %s29_s8 }
   0x3   :  { %s21_s28 = sshll.u32 %s260_s27, 4  ;;  %s261_s9 = smov [#allocation4]   ;;  %s22_s28 = int_to_ptr.vmem [resolvable:$true] %s21_s28 }
   0x4   :  { %24 = dma.hbm_to_vmem [thread:$0]  %s20_s26, 128, %s22_s28, [#allocation3]  }
   0x5   :  { %s31_s10 = sshll.u32 %s261_s9, 4  ;;  %s262_s11 = smov 64   ;;  %s32_s10 = int_to_ptr.vmem [resolvable:$true] %s31_s10 }
   0x6   :  { %s263_s12 = smov 4  }
   0x7   :  { %37 = dma.hbm_to_vmem [thread:$0]  %s30_s8, 128, %s32_s10, [#allocation5], %s262_s11, %s262_s11, %s263_s12  }
   0x8   :  { %256 = dma.done.wait [#allocation3], 128  }
   0x9   :  { %257 = vsyncadd [#allocation3], 4294967168 }
   0xa   :  { %258 = dma.done.wait [#allocation5], 128  }
   0xb   :  { %259 = vsyncadd [#allocation5], 4294967168  ;;  %v196_v0 = vld [vmem:[#allocation4] sm:$0xff]  ;;  %v57_v1 = vld [vmem:[#allocation2] sm:$0xff]  ;;  %vm71_vm0 = vcmask 130048   ;;  %vm110_vm1 = vcmask 261120  }
   0xc   :  { %v58_v2 = vpack.c.bf16 %v57_v1, %v57_v1  ;;  %82 = vmatpush.bf16.msra.mxu0 %v196_v0  ;;  %v198_v3 = vld [vmem:[%s337_s3 + $0x8] sm:$0xff]  ;;  %v197_v4 = vld [vmem:[%s337_s3] sm:$0xff]  ;;  %vm165_vm2 = vcmask 31744  }
   0xd   :  { %120 = vmatpush.bf16.msra.mxu1 %v198_v3  ;;  %v205_v5 = vld [vmem:[%s336_s2] ss:$0 sm:$0xff]  ;;  %v200_v11 = vld [vmem:[%s339_s5 + $0x8] sm:$0xff] }
   0xe   :  { %158 = vmatpush.bf16.msra.mxu2 %v200_v11  ;;  %v199_v12 = vld [vmem:[%s339_s5] sm:$0xff] }
   0xf   :  { %177 = vmatmul.msk.bf16.vlgmr.msra.gmra.mxu0 %vm71_vm0, %v58_v2  ;;  %v206_v13 = vld [vmem:[%s338_s4] ss:$0 sm:$0xff] }
  0x10   :  { %v207_v19 = vld [vmem:[%s340_s6] ss:$0 sm:$0xff] }
  0x11   :  { %121 = vmatpush.bf16.msra.mxu1 %v197_v4 }
  0x12   :  { %159 = vmatpush.bf16.msra.mxu2 %v199_v12 }
  0x8c   :  { %v84_v6 = vpop.f32.mrf.mxu0 }
  0x8d   :  { %v85_v7 = vadd.f32 %v205_v5, %v84_v6 }
  0x8f   :  { %v88_v8 = vmax.f32 %v85_v7, 0.0 }
  0x91   :  { %v89_v9 = vpack.c.bf16 %v88_v8, %v88_v8 }
  0x93   :  { %186 = vmatmul.msk.bf16.vlgmr.msra.gmra.mxu1 %vm110_vm1, %v89_v9 }
  0x94   :  { %v86_v10 = vpop.f32.mrf.mxu0 }
 0x110   :  { %v123_v14 = vpop.f32.mrf.mxu1 }
 0x111   :  { %v124_v15 = vadd.f32 %v206_v13, %v123_v14 }
 0x113   :  { %v127_v16 = vmax.f32 %v124_v15, 0.0 }
 0x115   :  { %v128_v17 = vpack.c.bf16 %v127_v16, %v127_v16 }
 0x117   :  { %195 = vmatmul.msk.bf16.vlgmr.msra.gmra.mxu2 %vm110_vm1, %v128_v17 }
 0x118   :  { %v125_v18 = vpop.f32.mrf.mxu1 }
 0x19a   :  { %v161_v20 = vpop.f32.mrf.mxu2 }
 0x19b   :  { %v162_v21 = vadd.f32 %v207_v19, %v161_v20 }
 0x19d   :  { %166 = vst.msk [vmem:[%s341_s7] sm:$0xff] %vm165_vm2, %v162_v21 }
 0x1a2   :  { %v163_v22 = vpop.f32.mrf.mxu2 }
 0x1a3   :  { %171 = vsyncpa [#allocation3], 1 }
 0x1a4   :  { %172 = vsyncpa [#allocation5], 1 }

</bundles_post_ra>
